<compile_context>
chip_gen: v7x
topology: tpu7x:2x2x1
jax: 0.10.0
libtpu: 0.0.40
codegen_flags: <defaults>
</compile_context>

<pallas_src>
import math

import jax
import jax.numpy as jnp
from jax.experimental import pallas as pl
from jax.experimental.pallas import tpu as pltpu

_INV_SQRT2 = 1.0 / math.sqrt(2.0)

# Abramowitz & Stegun 7.1.26 coefficients (max abs error ~1.5e-7 in erf).
_AS_P = 0.3275911
_AS_A1 = 0.254829592
_AS_A2 = -0.284496736
_AS_A3 = 1.421413741
_AS_A4 = -1.453152027
_AS_A5 = 1.061405429

# ~4 MiB per block buffer: in + out double-buffered -> ~16 MiB VMEM, within the
# explicit 32 MiB limit set below (portable across v5e / v6e / v7x).
_TARGET_BLOCK_BYTES = 4 * 1024 * 1024


def _gelu_kernel(x_ref, o_ref):
    # Upcast once per load; erf core stays in f32 (v5e has no bf16 VPU/EUP).
    x = x_ref[...].astype(jnp.float32)

    # erf(|x|/sqrt(2)) via A&S 7.1.26: one EUP exp + one divide + short Horner.
    u = jnp.abs(x) * _INV_SQRT2
    t = 1.0 / (1.0 + _AS_P * u)
    poly = ((((_AS_A5 * t + _AS_A4) * t + _AS_A3) * t + _AS_A2) * t + _AS_A1) * t
    e = jnp.exp(-(u * u))                      # EUP slot
    erf_abs = 1.0 - poly * e
    erf = jnp.where(x < 0.0, -erf_abs, erf_abs)

    # GeLU: 0.5 * x * (1 + erf(x / sqrt(2)))
    y = 0.5 * x * (1.0 + erf)
    o_ref[...] = y.astype(o_ref.dtype)


def _gelu_2d(x2d, target_block_bytes):
    rows, lane = x2d.shape
    dtype = x2d.dtype
    itemsize = jnp.dtype(dtype).itemsize
    n = rows * lane

    max_block_rows = max(8, (target_block_bytes // (lane * itemsize)) // 8 * 8)
    if rows <= max_block_rows:
        if rows >= 16:
            # Split into >= 2 blocks so both v7x TensorCores get work.
            block_rows = ((pl.cdiv(rows, 2) + 7) // 8) * 8
        else:
            block_rows = rows  # full-extent block bypasses the 8-row rule
    else:
        block_rows = max_block_rows
    grid = (pl.cdiv(rows, block_rows),)  # partial last block is masked by Pallas

    cost = pl.CostEstimate(
        flops=25 * n,
        transcendentals=n,               # one exp per element
        bytes_accessed=2 * n * itemsize,
    )

    # NOTE: if a profile ever shows exposed DMA waits, pipeline_mode=pl.Buffered(3)
    # on the input spec is a nearly-free follow-up; if xprof shows one idle v7x TC,
    # switch the axis semantics to pltpu.CORE_PARALLEL.
    return pl.pallas_call(
        _gelu_kernel,
        out_shape=jax.ShapeDtypeStruct((rows, lane), dtype),
        grid_spec=pltpu.PrefetchScalarGridSpec(
            num_scalar_prefetch=0,
            grid=grid,
            in_specs=[pl.BlockSpec((block_rows, lane), lambda i: (i, 0))],
            out_specs=pl.BlockSpec((block_rows, lane), lambda i: (i, 0)),
        ),
        compiler_params=pltpu.CompilerParams(
            dimension_semantics=("parallel",),
            vmem_limit_bytes=32 * 1024 * 1024,
        ),
        cost_estimate=cost,
    )(x2d)


def gelu_pallas(x, *, target_block_bytes=_TARGET_BLOCK_BYTES):
    """Elementwise exact-semantics GeLU over any shape via a lane-dense 2-D slab."""
    orig_shape = x.shape
    dtype = x.dtype
    if not jnp.issubdtype(dtype, jnp.floating):
        raise TypeError(f"gelu_pallas expects a floating dtype, got {dtype}")
    n = x.size
    if n == 0:
        return x

    # Widest lane-dense last dim (multiple of 128) dividing n -> no pad/slice.
    lane = None
    for cand in (4096, 2048, 1024, 512, 256, 128):
        if n % cand == 0:
            lane = cand
            break

    x_flat = jnp.ravel(x)

    if lane is None:
        # Awkward size: kernel on the 128-aligned prefix, tiny (<128 elem) tail
        # in plain jnp. No whole-tensor pad + slice HBM round-trips.
        lane = 128
        n_main = (n // lane) * lane
        tail = x_flat[n_main:]
        tail_out = (0.5 * tail * (1.0 + jax.lax.erf(tail * _INV_SQRT2))).astype(dtype)
        if n_main == 0:
            return tail_out.reshape(orig_shape)
        main_out = _gelu_2d(x_flat[:n_main].reshape(n_main // lane, lane),
                            target_block_bytes)
        out_flat = jnp.concatenate([main_out.reshape(-1), tail_out])
        return out_flat.reshape(orig_shape)

    rows = n // lane
    out2d = _gelu_2d(x_flat.reshape(rows, lane), target_block_bytes)
    return out2d.reshape(orig_shape)


class GeLU:
    """Mirror of the PyTorch module (the `alpha` buffer is registered but unused
    in forward; kept only for parity)."""

    def __init__(self, in_channel):
        self.alpha = jnp.asarray([math.sqrt(2.0 / math.pi)], dtype=jnp.float32)

    def __call__(self, x):
        return gelu_pallas(x)


def _reference_gelu(x):
    return 0.5 * x * (1.0 + jax.lax.erf(x / math.sqrt(2.0)))


if __name__ == "__main__":
    key = jax.random.PRNGKey(0)
    # NCHW input consistent with a conv-backbone activation
    x = jax.random.normal(key, (2, 4, 16, 16), dtype=jnp.float32)

    mod = GeLU(in_channel=4)
    y = jax.block_until_ready(mod(x))

    y_ref = _reference_gelu(x)
    assert y.shape == x.shape and y.dtype == x.dtype
    assert jnp.allclose(y, y_ref, atol=1e-5, rtol=1e-5), float(
        jnp.max(jnp.abs(y - y_ref)))

    print("KERNEL_OK")
</pallas_src>

<mosaic_0001>
module attributes {stable_mosaic.version = 11 : i64} {
  func.func @_gelu_kernel(%arg0: i32, %arg1: memref<1x2048xf32, #tpu.memory_space<vmem>>, %arg2: memref<1x2048xf32, #tpu.memory_space<vmem>>) attributes {dimension_semantics = [#tpu.dimension_semantics<parallel>], iteration_bounds = array<i64: 1>, scalar_prefetch = 0 : i64, scratch_operands = 0 : i64, tpu.core_type = #tpu.core_type<tc>, window_params = [{transform_indices = @transform_0, window_bounds = array<i64: 1, 2048>}, {transform_indices = @transform_1, window_bounds = array<i64: 1, 2048>}]} {
    %c0 = arith.constant 0 : index
    %c0_0 = arith.constant 0 : index
    %0 = vector.load %arg1[%c0, %c0_0] : memref<1x2048xf32, #tpu.memory_space<vmem>>, vector<1x2048xf32>
    %1 = math.absf %0 : vector<1x2048xf32>
    %cst = arith.constant 0.707106769 : f32
    %2 = vector.broadcast %cst : f32 to vector<1x2048xf32>
    %3 = arith.mulf %1, %2 : vector<1x2048xf32>
    %cst_1 = arith.constant 0.327591091 : f32
    %4 = vector.broadcast %cst_1 : f32 to vector<1x2048xf32>
    %5 = arith.mulf %4, %3 : vector<1x2048xf32>
    %cst_2 = arith.constant 1.000000e+00 : f32
    %6 = vector.broadcast %cst_2 : f32 to vector<1x2048xf32>
    %7 = arith.addf %6, %5 : vector<1x2048xf32>
    %cst_3 = arith.constant 1.000000e+00 : f32
    %8 = vector.broadcast %cst_3 : f32 to vector<1x2048xf32>
    %9 = arith.divf %8, %7 : vector<1x2048xf32>
    %cst_4 = arith.constant 1.06140542 : f32
    %10 = vector.broadcast %cst_4 : f32 to vector<1x2048xf32>
    %11 = arith.mulf %10, %9 : vector<1x2048xf32>
    %cst_5 = arith.constant -1.45315206 : f32
    %12 = vector.broadcast %cst_5 : f32 to vector<1x2048xf32>
    %13 = arith.addf %11, %12 : vector<1x2048xf32>
    %14 = arith.mulf %13, %9 : vector<1x2048xf32>
    %cst_6 = arith.constant 1.42141378 : f32
    %15 = vector.broadcast %cst_6 : f32 to vector<1x2048xf32>
    %16 = arith.addf %14, %15 : vector<1x2048xf32>
    %17 = arith.mulf %16, %9 : vector<1x2048xf32>
    %cst_7 = arith.constant -0.284496725 : f32
    %18 = vector.broadcast %cst_7 : f32 to vector<1x2048xf32>
    %19 = arith.addf %17, %18 : vector<1x2048xf32>
    %20 = arith.mulf %19, %9 : vector<1x2048xf32>
    %cst_8 = arith.constant 0.254829586 : f32
    %21 = vector.broadcast %cst_8 : f32 to vector<1x2048xf32>
    %22 = arith.addf %20, %21 : vector<1x2048xf32>
    %23 = arith.mulf %22, %9 : vector<1x2048xf32>
    %24 = arith.mulf %3, %3 : vector<1x2048xf32>
    %cst_9 = arith.constant 0.000000e+00 : f32
    %25 = vector.broadcast %cst_9 : f32 to vector<1x2048xf32>
    %26 = arith.subf %25, %24 : vector<1x2048xf32>
    %27 = math.exp %26 : vector<1x2048xf32>
    %28 = arith.mulf %23, %27 : vector<1x2048xf32>
    %cst_10 = arith.constant 1.000000e+00 : f32
    %29 = vector.broadcast %cst_10 : f32 to vector<1x2048xf32>
    %30 = arith.subf %29, %28 : vector<1x2048xf32>
    %cst_11 = arith.constant 0.000000e+00 : f32
    %31 = vector.broadcast %cst_11 : f32 to vector<1x2048xf32>
    %32 = arith.cmpf olt, %0, %31 : vector<1x2048xf32>
    %cst_12 = arith.constant 0.000000e+00 : f32
    %33 = vector.broadcast %cst_12 : f32 to vector<1x2048xf32>
    %34 = arith.subf %33, %30 : vector<1x2048xf32>
    %35 = arith.select %32, %34, %30 : vector<1x2048xi1>, vector<1x2048xf32>
    %cst_13 = arith.constant 5.000000e-01 : f32
    %36 = vector.broadcast %cst_13 : f32 to vector<1x2048xf32>
    %37 = arith.mulf %36, %0 : vector<1x2048xf32>
    %cst_14 = arith.constant 1.000000e+00 : f32
    %38 = vector.broadcast %cst_14 : f32 to vector<1x2048xf32>
    %39 = arith.addf %38, %35 : vector<1x2048xf32>
    %40 = arith.mulf %37, %39 : vector<1x2048xf32>
    %c0_15 = arith.constant 0 : index
    %c0_16 = arith.constant 0 : index
    %41 = vector.load %arg2[%c0_15, %c0_16] : memref<1x2048xf32, #tpu.memory_space<vmem>>, vector<1x2048xf32>
    tpu.vector_store %arg2[%c0_15, %c0_16], %40 {strides = array<i32>} : memref<1x2048xf32, #tpu.memory_space<vmem>>, vector<1x2048xf32>,
    return
  }
  func.func @transform_0(%arg0: i32) -> (i32, i32) {
    %c0_i32 = arith.constant 0 : i32
    %c0_i32_0 = arith.constant 0 : i32
    return %arg0, %c0_i32 : i32, i32
  }
  func.func @transform_1(%arg0: i32) -> (i32, i32) {
    %c0_i32 = arith.constant 0 : i32
    %c0_i32_0 = arith.constant 0 : i32
    return %arg0, %c0_i32 : i32, i32
  }
}

</mosaic_0001>

<bundles_post_ra>
// kernel: tpu_custom_call.1
= control target key start
LH: loop header
LB: loop body
LE: loop exit
PB: predicated region body
PF: predicated region fallthrough
CT: control target
= control target key end

     0   :  { %6 = vsyncpa [#allocation3], 0  ;;  %s188_s0 = inlined_call_operand.hbm [shape: f32[1,2048], index: 0, kind: input, shape index: {}]   ;;  %s189_s1 = inlined_call_operand.hbm [shape: f32[1,2048], index: 1, kind: output, shape index: {}]  }
   0x1   :  { %7 = vsyncpa [#allocation4], 0  ;;  %s152_s6 = smov [#allocation2]   ;;  %s104_s10 = scalar_lea.hbm %s188_s0, 256 }
   0x2   :  { %s14_s7 = sshll.u32 %s152_s6, 4  ;;  %p105_p0 = scmp.ne.s32.totalorder %s188_s0, %s104_s10  ;;  %s15_s7 = int_to_ptr.vmem [resolvable:$true] %s14_s7 }
   0x3   :  { %p108_p1 = scmp.lt.u32.totalorder %s104_s10, %s188_s0 }
   0x5   :  { %p110_p2 = pnand %p108_p1, %p105_p0 }
   0x7   :  { %113 = shalt.err (!%p110_p2)
}
   0x8   :  { %s114_s15 = scalar_lea.vmem %s15_s7, 256  ;;  %p119_p4 = scmp.lt.s32.totalorder %s15_s7, %s15_s7 }
   0x9   :  { %p115_p3 = scmp.ne.s32.totalorder %s15_s7, %s114_s15  ;;  %p120_p5 = scmp.lt.s32.totalorder %s114_s15, %s114_s15 }
   0xb   :  { %p121_p6 = por %p120_p5, %p119_p4 }
   0xd   :  { %p122_p7 = pnand %p121_p6, %p115_p3 }
   0xf   :  { %125 = shalt.err (!%p122_p7)
}
  0x10   :  { %17 = dma.hbm_to_vmem [thread:$0]  %s188_s0, 256, %s15_s7, [#allocation3]  }
  0x11   :  { %148 = dma.done.wait [#allocation3], 256  }
  0x12   :  { %149 = vsyncadd [#allocation3], 4294967040  ;;  %v21_v0 = vld [vmem:[#allocation2] sm:$0xff]  ;;  %v22_v1 = vld [vmem:[#allocation2 + $0x8] sm:$0xff]  ;;  %s153_s0 = smov [#allocation5]  }
  0x13   :  { %v23_v2 = vand.u32 2147483647, %v21_v0  ;;  %v24_v3 = vand.u32 2147483647, %v22_v1  ;;  %vm65_vm0 = vcmp.lt.f32.partialorder %v21_v0, 0.0  ;;  %vm66_vm1 = vcmp.lt.f32.partialorder %v22_v1, 0.0 }
  0x14   :  { %v71_v43 = vmul.f32 0.5, %v21_v0  ;;  %v72_v46 = vmul.f32 0.5, %v22_v1  ;;  %s85_s18 = sshll.u32 %s153_s0, 4  ;;  %s86_s18 = int_to_ptr.vmem [resolvable:$true] %s85_s18 }
  0x15   :  { %v25_v4 = vmul.f32 0.70710677, %v23_v2  ;;  %v26_v5 = vmul.f32 0.70710677, %v24_v3  ;;  %s126_s19 = scalar_lea.vmem %s86_s18, 256  ;;  %p131_p9 = scmp.lt.s32.totalorder %s86_s18, %s86_s18 }
  0x16   :  { %p127_p8 = scmp.ne.s32.totalorder %s86_s18, %s126_s19  ;;  %p132_p10 = scmp.lt.s32.totalorder %s126_s19, %s126_s19 }
  0x17   :  { %v27_v6 = vmul.f32 0.3275911, %v25_v4  ;;  %v28_v7 = vmul.f32 0.3275911, %v26_v5  ;;  %v53_v10 = vmul.f32 %v25_v4, %v25_v4  ;;  %v54_v11 = vmul.f32 %v26_v5, %v26_v5 }
  0x18   :  { %p133_p11 = por %p132_p10, %p131_p9 }
  0x19   :  { %v29_v8 = vadd.f32 1.0, %v27_v6  ;;  %v30_v9 = vadd.f32 1.0, %v28_v7  ;;  %v55_v12 = vsub.f32 0.0, %v53_v10  ;;  %v56_v13 = vsub.f32 0.0, %v54_v11 }
  0x1a   :  { %p134_p12 = pnand %p133_p11, %p127_p8 }
  0x1b   :  { %96 = vrcp.f32 %v29_v8  ;;  %v57_v17 = vmul.f32 1.442695, %v55_v12  ;;  %v59_v20 = vmul.f32 1.442695, %v56_v13 }
  0x1c   :  { %98 = vrcp.f32 %v30_v9 }
  0x1d   :  { %100 = vpow2.f32 %v57_v17 }
  0x1e   :  { %102 = vpow2.f32 %v59_v20 }
  0x25   :  { %v97_v14 = vpop.eup %96 }
  0x26   :  { %v99_v15 = vpop.eup %98  ;;  %v35_v16 = vmul.f32 1.0614054, %v97_v14 }
  0x27   :  { %v36_v18 = vmul.f32 1.0614054, %v99_v15  ;;  %v101_v33 = vpop.eup %100 }
  0x28   :  { %v37_v19 = vadd.f32 -1.4531521, %v35_v16  ;;  %v103_v35 = vpop.eup %102 }
  0x29   :  { %v38_v21 = vadd.f32 -1.4531521, %v36_v18 }
  0x2a   :  { %v39_v22 = vmul.f32 %v97_v14, %v37_v19 }
  0x2b   :  { %v40_v23 = vmul.f32 %v99_v15, %v38_v21 }
  0x2c   :  { %v41_v24 = vadd.f32 1.4214138, %v39_v22 }
  0x2d   :  { %v42_v25 = vadd.f32 1.4214138, %v40_v23 }
  0x2e   :  { %v43_v26 = vmul.f32 %v97_v14, %v41_v24 }
  0x2f   :  { %v44_v27 = vmul.f32 %v99_v15, %v42_v25 }
  0x30   :  { %v45_v28 = vadd.f32 -0.28449672, %v43_v26 }
  0x31   :  { %v46_v29 = vadd.f32 -0.28449672, %v44_v27 }
  0x32   :  { %v47_v30 = vmul.f32 %v97_v14, %v45_v28 }
  0x33   :  { %v48_v31 = vmul.f32 %v99_v15, %v46_v29 }
  0x34   :  { %v49_v32 = vadd.f32 0.2548296, %v47_v30 }
  0x35   :  { %v50_v34 = vadd.f32 0.2548296, %v48_v31 }
  0x36   :  { %v51_v36 = vmul.f32 %v97_v14, %v49_v32 }
  0x37   :  { %v52_v37 = vmul.f32 %v99_v15, %v50_v34 }
  0x38   :  { %v61_v38 = vmul.f32 %v101_v33, %v51_v36 }
  0x39   :  { %v62_v39 = vmul.f32 %v103_v35, %v52_v37 }
  0x3a   :  { %v63_v40 = vsub.f32 1.0, %v61_v38 }
  0x3b   :  { %v64_v41 = vsub.f32 1.0, %v62_v39 }
  0x3c   :  { %v67_v42 = vsub.f32 0.0, %v63_v40 }
  0x3d   :  { %v68_v44 = vsub.f32 0.0, %v64_v41 }
  0x3e   :  { %v69_v45 = vsel %vm65_vm0, %v67_v42, %v63_v40 }
  0x3f   :  { %v73_v47 = vadd.f32 1.0, %v69_v45  ;;  %v70_v48 = vsel %vm66_vm1, %v68_v44, %v64_v41 }
  0x40   :  { %v74_v49 = vadd.f32 1.0, %v70_v48 }
  0x41   :  { %v75_v50 = vmul.f32 %v73_v47, %v71_v43 }
  0x42   :  { %v76_v51 = vmul.f32 %v74_v49, %v72_v46 }
  0x43   :  { %77 = vst [vmem:[#allocation5] sm:$0xff] %v75_v50 }
  0x44   :  { %78 = vst [vmem:[#allocation5 + $0x8] sm:$0xff] %v76_v51 }
  0x45   :  { %137 = shalt.err (!%p134_p12)
}
  0x46   :  { %s138_s22 = scalar_lea.hbm %s189_s1, 256 }
  0x47   :  { %p139_p13 = scmp.ne.s32.totalorder %s189_s1, %s138_s22  ;;  %p142_p0 = scmp.lt.u32.totalorder %s138_s22, %s189_s1 }
  0x49   :  { %p144_p1 = pnand %p142_p0, %p139_p13 }
  0x4b   :  { %147 = shalt.err (!%p144_p1)
}
  0x4c   :  { %88 = dma.vmem_to_hbm [thread:$0]  %s86_s18, 256, %s189_s1, [#allocation4]  }
  0x4d   :  { %150 = dma.done.wait [#allocation4], 256  }
  0x4e   :  { %151 = vsyncadd [#allocation4], 4294967040 }
  0x4f   :  { %92 = vsyncpa [#allocation3], 1 }
  0x50   :  { %93 = vsyncpa [#allocation4], 1 }

</bundles_post_ra>
